<compile_context>
chip_gen: v6e
topology: v6e:2x2x1
jax: 0.10.0
libtpu: 0.0.40
codegen_flags: <defaults>
</compile_context>

<pallas_src>
import jax
import jax.numpy as jnp
from jax.experimental import pallas as pl
from jax.experimental.pallas import tpu as pltpu

N_STATES = 2
HIDDEN = 128
N_ACTIONS = 4
OUT_PAD = 128          # lane-dense padded output width (valid cols = N_ACTIONS)
ALIGN = 16             # batch-row alignment (bf16 output native sublane tile)


def dqn_kernel(x_ref, w1_ref, b1_ref, w2_ref, b2_ref, w3_ref, b3_ref, o_ref):
    x = x_ref[...]                                          # (tb, 2)   f32
    # fc1 (K=2): two VPU broadcast-FMAs instead of a >98%-zero-padded MXU pass.
    h1 = (x[:, 0:1] * w1_ref[0:1, :]
          + x[:, 1:2] * w1_ref[1:2, :]
          + b1_ref[...])
    h1 = jnp.maximum(h1, 0.0)                               # (tb, 128) f32
    # fc2: bf16 operands on the MXU, f32 accumulate; bias/ReLU in f32 (VPU).
    h2 = jnp.dot(h1.astype(jnp.bfloat16), w2_ref[...],
                 preferred_element_type=jnp.float32) + b2_ref[...]
    h2 = jnp.maximum(h2, 0.0)                               # (tb, 128) f32
    # fc3: weight padded to 128 output lanes -> full-width unmasked store.
    q = jnp.dot(h2.astype(jnp.bfloat16), w3_ref[...],
                preferred_element_type=jnp.float32) + b3_ref[...]
    # bf16 store halves the dominant HBM writeback stream; stays lane-dense.
    o_ref[...] = q.astype(jnp.bfloat16)                     # (tb, 128) bf16


def _round_up(n, m):
    return (n + m - 1) // m * m


def dqn_forward(x, params, *, max_tile=1024):
    """Q(x) for x of shape (B, 2); returns (B, 4) float32."""
    w1, b1, w2, b2, w3, b3 = params
    B = x.shape[0]

    # Batch tiling:
    #  * tb is a multiple of 16 (bf16 output sublane tile).
    #  * For B > 16 we force at least 2 grid steps so v7x's second TensorCore
    #    gets work from the "parallel" batch axis.
    #  * tb is capped at max_tile (per-step VMEM ~ a few hundred KiB at 1024,
    #    trivially inside v7x's 64 MiB and the default scoped limit).
    B16 = _round_up(max(B, 1), ALIGN)
    if B16 <= ALIGN:
        tb = B16                                   # tiny inference batch: 1 step
    else:
        half = _round_up(-(-B16 // 2), ALIGN)      # cdiv(B16, 2) rounded to 16
        tb = min(max_tile, half)
    B_pad = _round_up(B16, tb)
    nb = B_pad // tb

    x_p = x if B_pad == B else jnp.pad(x, ((0, B_pad - B), (0, 0)))

    # Pad fc3 to 128 output lanes (lane-dense out_spec); bf16 weights for MXU.
    # A narrow (B_pad, 8) f32 output variant writes 32x fewer HBM bytes but
    # uses masked vst.msk stores; keep the padded bf16 slab unless an A/B
    # measurement on the target chip favors the narrow layout.
    w3_p = jnp.zeros((HIDDEN, OUT_PAD), jnp.float32).at[:, :N_ACTIONS].set(w3)
    b3_p = jnp.zeros((1, OUT_PAD), jnp.float32).at[:, :N_ACTIONS].set(b3)
    w2_bf = w2.astype(jnp.bfloat16)
    w3_bf = w3_p.astype(jnp.bfloat16)

    flops = 2 * B_pad * (N_STATES * HIDDEN + HIDDEN * HIDDEN + HIDDEN * OUT_PAD)
    bytes_accessed = (x_p.size * 4 + B_pad * OUT_PAD * 2
                      + w1.size * 4 + b1.size * 4
                      + w2_bf.size * 2 + b2.size * 4
                      + w3_bf.size * 2 + b3_p.size * 4)

    pinned = lambda shape: pl.BlockSpec(shape, lambda i: (0, 0))

    out = pl.pallas_call(
        dqn_kernel,
        out_shape=jax.ShapeDtypeStruct((B_pad, OUT_PAD), jnp.bfloat16),
        grid=(nb,),
        in_specs=[
            pl.BlockSpec((tb, N_STATES), lambda i: (i, 0)),   # x: tiled over batch
            pinned((N_STATES, HIDDEN)), pinned((1, HIDDEN)),  # fc1 (f32, VPU path)
            pinned((HIDDEN, HIDDEN)),   pinned((1, HIDDEN)),  # fc2 (W bf16, b f32)
            pinned((HIDDEN, OUT_PAD)),  pinned((1, OUT_PAD)), # fc3 (padded, W bf16)
        ],
        out_specs=pl.BlockSpec((tb, OUT_PAD), lambda i: (i, 0)),
        compiler_params=pltpu.CompilerParams(
            dimension_semantics=("parallel",),                # shard grid on v7x's 2 TCs
        ),
        cost_estimate=pl.CostEstimate(
            flops=flops, transcendentals=0, bytes_accessed=bytes_accessed),
    )(x_p, w1, b1, w2_bf, b2, w3_bf, b3_p)

    return out[:B, :N_ACTIONS].astype(jnp.float32)


def init_params(key):
    """Deterministic init mirroring PyTorch Linear default (U[-1/sqrt(fan_in), ...])."""
    ks = jax.random.split(key, 6)

    def linear(kw, kb, fan_in, fan_out):
        bound = 1.0 / jnp.sqrt(fan_in)
        w = jax.random.uniform(kw, (fan_in, fan_out), jnp.float32, -bound, bound)
        b = jax.random.uniform(kb, (1, fan_out), jnp.float32, -bound, bound)
        return w, b

    w1, b1 = linear(ks[0], ks[1], N_STATES, HIDDEN)
    w2, b2 = linear(ks[2], ks[3], HIDDEN, HIDDEN)
    w3, b3 = linear(ks[4], ks[5], HIDDEN, N_ACTIONS)
    return (w1, b1, w2, b2, w3, b3)


def dqn_reference_f32(x, params):
    """Pure-f32 reference matching the PyTorch module semantics."""
    w1, b1, w2, b2, w3, b3 = params
    h1 = jnp.maximum(x @ w1 + b1, 0.0)
    h2 = jnp.maximum(h1 @ w2 + b2, 0.0)
    return h2 @ w3 + b3


def dqn_reference_matched(x, params):
    """Reference mirroring the kernel's bf16-matmul / f32-acc / bf16-store math."""
    w1, b1, w2, b2, w3, b3 = params
    h1 = jnp.maximum(x[:, 0:1] * w1[0:1, :] + x[:, 1:2] * w1[1:2, :] + b1, 0.0)
    h2 = jnp.maximum(
        jnp.dot(h1.astype(jnp.bfloat16), w2.astype(jnp.bfloat16),
                preferred_element_type=jnp.float32) + b2, 0.0)
    q = jnp.dot(h2.astype(jnp.bfloat16), w3.astype(jnp.bfloat16),
                preferred_element_type=jnp.float32) + b3
    return q.astype(jnp.bfloat16).astype(jnp.float32)


if __name__ == "__main__":
    key = jax.random.PRNGKey(0)
    k_x, k_p = jax.random.split(key)
    params = init_params(k_p)

    # Small inference-style batch (single grid step).
    B = 8
    x = jax.random.normal(k_x, (B, N_STATES), dtype=jnp.float32)
    q = dqn_forward(x, params)
    jax.block_until_ready(q)
    assert q.shape == (B, N_ACTIONS)

    # Tight check vs a reference that uses the same bf16 matmul/store precision.
    ref_matched = dqn_reference_matched(x, params)
    assert jnp.allclose(q, ref_matched, atol=5e-3, rtol=5e-3)

    # Loose check vs the exact f32 PyTorch-equivalent forward (bf16 matmul and
    # bf16 output rounding introduce ~1e-2-level deviations, fine for DQN).
    ref_f32 = dqn_reference_f32(x, params)
    assert jnp.allclose(q, ref_f32, atol=1e-1, rtol=5e-2)

    # Medium batch exercising the multi-step (>= 2 grid steps / padded) path.
    B2 = 200
    x2 = jax.random.normal(jax.random.PRNGKey(1), (B2, N_STATES), dtype=jnp.float32)
    q2 = dqn_forward(x2, params)
    jax.block_until_ready(q2)
    assert q2.shape == (B2, N_ACTIONS)
    assert jnp.allclose(q2, dqn_reference_matched(x2, params), atol=5e-3, rtol=5e-3)

    print("KERNEL_OK")
</pallas_src>

<mosaic_0001>
module attributes {stable_mosaic.version = 11 : i64} {
  func.func @dqn_kernel(%arg0: i32, %arg1: memref<16x2xf32, #tpu.memory_space<vmem>>, %arg2: memref<2x128xf32, #tpu.memory_space<vmem>>, %arg3: memref<1x128xf32, #tpu.memory_space<vmem>>, %arg4: memref<128x128xbf16, #tpu.memory_space<vmem>>, %arg5: memref<1x128xf32, #tpu.memory_space<vmem>>, %arg6: memref<128x128xbf16, #tpu.memory_space<vmem>>, %arg7: memref<1x128xf32, #tpu.memory_space<vmem>>, %arg8: memref<16x128xbf16, #tpu.memory_space<vmem>>) attributes {dimension_semantics = [#tpu.dimension_semantics<parallel>], iteration_bounds = array<i64: 1>, scalar_prefetch = 0 : i64, scratch_operands = 0 : i64, tpu.core_type = #tpu.core_type<tc>, window_params = [{transform_indices = @transform_0, window_bounds = array<i64: 16, 2>}, {pipeline_mode = #tpu.pipeline_mode<synchronous>, transform_indices = @transform_1, window_bounds = array<i64: 2, 128>}, {pipeline_mode = #tpu.pipeline_mode<synchronous>, transform_indices = @transform_2, window_bounds = array<i64: 1, 128>}, {pipeline_mode = #tpu.pipeline_mode<synchronous>, transform_indices = @transform_3, window_bounds = array<i64: 128, 128>}, {pipeline_mode = #tpu.pipeline_mode<synchronous>, transform_indices = @transform_4, window_bounds = array<i64: 1, 128>}, {pipeline_mode = #tpu.pipeline_mode<synchronous>, transform_indices = @transform_5, window_bounds = array<i64: 128, 128>}, {pipeline_mode = #tpu.pipeline_mode<synchronous>, transform_indices = @transform_6, window_bounds = array<i64: 1, 128>}, {transform_indices = @transform_7, window_bounds = array<i64: 16, 128>}]} {
    %c0 = arith.constant 0 : index
    %c0_0 = arith.constant 0 : index
    %0 = vector.load %arg1[%c0, %c0_0] : memref<16x2xf32, #tpu.memory_space<vmem>>, vector<16x2xf32>
    %1 = vector.extract_strided_slice %0 {offsets = [0, 0], sizes = [16, 1], strides = [1, 1]} : vector<16x2xf32> to vector<16x1xf32>
    %c0_1 = arith.constant 0 : index
    %c0_2 = arith.constant 0 : index
    %2 = vector.load %arg2[%c0_1, %c0_2] : memref<2x128xf32, #tpu.memory_space<vmem>>, vector<1x128xf32>
    %3 = vector.broadcast %1 : vector<16x1xf32> to vector<16x128xf32>
    %4 = vector.broadcast %2 : vector<1x128xf32> to vector<16x128xf32>
    %5 = arith.mulf %3, %4 : vector<16x128xf32>
    %6 = vector.extract_strided_slice %0 {offsets = [0, 1], sizes = [16, 1], strides = [1, 1]} : vector<16x2xf32> to vector<16x1xf32>
    %c1 = arith.constant 1 : index
    %c0_3 = arith.constant 0 : index
    %7 = vector.load %arg2[%c1, %c0_3] : memref<2x128xf32, #tpu.memory_space<vmem>>, vector<1x128xf32>
    %8 = vector.broadcast %6 : vector<16x1xf32> to vector<16x128xf32>
    %9 = vector.broadcast %7 : vector<1x128xf32> to vector<16x128xf32>
    %10 = arith.mulf %8, %9 : vector<16x128xf32>
    %11 = arith.addf %5, %10 : vector<16x128xf32>
    %c0_4 = arith.constant 0 : index
    %c0_5 = arith.constant 0 : index
    %12 = vector.load %arg3[%c0_4, %c0_5] : memref<1x128xf32, #tpu.memory_space<vmem>>, vector<1x128xf32>
    %13 = vector.broadcast %12 : vector<1x128xf32> to vector<16x128xf32>
    %14 = arith.addf %11, %13 : vector<16x128xf32>
    %cst = arith.constant 0.000000e+00 : f32
    %15 = vector.broadcast %cst : f32 to vector<16x128xf32>
    %16 = arith.maximumf %14, %15 : vector<16x128xf32>
    %17 = arith.truncf %16 : vector<16x128xf32> to vector<16x128xbf16>
    %c0_6 = arith.constant 0 : index
    %c0_7 = arith.constant 0 : index
    %18 = vector.load %arg4[%c0_6, %c0_7] : memref<128x128xbf16, #tpu.memory_space<vmem>>, vector<128x128xbf16>
    %cst_8 = arith.constant dense<0.000000e+00> : vector<16x128xf32>
    %19 = tpu.matmul %17, %18, %cst_8 {dimension_numbers = #tpu.dot_dimension_numbers<[1], [0], [0], [1], [0, 0, 1, 1], [], []>} : vector<16x128xbf16>, vector<128x128xbf16>, vector<16x128xf32> -> vector<16x128xf32>
    %c0_9 = arith.constant 0 : index
    %c0_10 = arith.constant 0 : index
    %20 = vector.load %arg5[%c0_9, %c0_10] : memref<1x128xf32, #tpu.memory_space<vmem>>, vector<1x128xf32>
    %21 = vector.broadcast %20 : vector<1x128xf32> to vector<16x128xf32>
    %22 = arith.addf %19, %21 : vector<16x128xf32>
    %cst_11 = arith.constant 0.000000e+00 : f32
    %23 = vector.broadcast %cst_11 : f32 to vector<16x128xf32>
    %24 = arith.maximumf %22, %23 : vector<16x128xf32>
    %25 = arith.truncf %24 : vector<16x128xf32> to vector<16x128xbf16>
    %c0_12 = arith.constant 0 : index
    %c0_13 = arith.constant 0 : index
    %26 = vector.load %arg6[%c0_12, %c0_13] : memref<128x128xbf16, #tpu.memory_space<vmem>>, vector<128x128xbf16>
    %cst_14 = arith.constant dense<0.000000e+00> : vector<16x128xf32>
    %27 = tpu.matmul %25, %26, %cst_14 {dimension_numbers = #tpu.dot_dimension_numbers<[1], [0], [0], [1], [0, 0, 1, 1], [], []>} : vector<16x128xbf16>, vector<128x128xbf16>, vector<16x128xf32> -> vector<16x128xf32>
    %c0_15 = arith.constant 0 : index
    %c0_16 = arith.constant 0 : index
    %28 = vector.load %arg7[%c0_15, %c0_16] : memref<1x128xf32, #tpu.memory_space<vmem>>, vector<1x128xf32>
    %29 = vector.broadcast %28 : vector<1x128xf32> to vector<16x128xf32>
    %30 = arith.addf %27, %29 : vector<16x128xf32>
    %31 = arith.truncf %30 : vector<16x128xf32> to vector<16x128xbf16>
    %c0_17 = arith.constant 0 : index
    %c0_18 = arith.constant 0 : index
    %32 = vector.load %arg8[%c0_17, %c0_18] : memref<16x128xbf16, #tpu.memory_space<vmem>>, vector<16x128xbf16>
    tpu.vector_store %arg8[%c0_17, %c0_18], %31 {strides = array<i32>} : memref<16x128xbf16, #tpu.memory_space<vmem>>, vector<16x128xbf16>,
    return
  }
  func.func @transform_0(%arg0: i32) -> (i32, i32) {
    %c0_i32 = arith.constant 0 : i32
    %c0_i32_0 = arith.constant 0 : i32
    return %arg0, %c0_i32 : i32, i32
  }
  func.func @transform_1(%arg0: i32) -> (i32, i32) {
    %c0_i32 = arith.constant 0 : i32
    %c0_i32_0 = arith.constant 0 : i32
    %c0_i32_1 = arith.constant 0 : i32
    return %c0_i32, %c0_i32_0 : i32, i32
  }
  func.func @transform_2(%arg0: i32) -> (i32, i32) {
    %c0_i32 = arith.constant 0 : i32
    %c0_i32_0 = arith.constant 0 : i32
    %c0_i32_1 = arith.constant 0 : i32
    return %c0_i32, %c0_i32_0 : i32, i32
  }
  func.func @transform_3(%arg0: i32) -> (i32, i32) {
    %c0_i32 = arith.constant 0 : i32
    %c0_i32_0 = arith.constant 0 : i32
    %c0_i32_1 = arith.constant 0 : i32
    return %c0_i32, %c0_i32_0 : i32, i32
  }
  func.func @transform_4(%arg0: i32) -> (i32, i32) {
    %c0_i32 = arith.constant 0 : i32
    %c0_i32_0 = arith.constant 0 : i32
    %c0_i32_1 = arith.constant 0 : i32
    return %c0_i32, %c0_i32_0 : i32, i32
  }
  func.func @transform_5(%arg0: i32) -> (i32, i32) {
    %c0_i32 = arith.constant 0 : i32
    %c0_i32_0 = arith.constant 0 : i32
    %c0_i32_1 = arith.constant 0 : i32
    return %c0_i32, %c0_i32_0 : i32, i32
  }
  func.func @transform_6(%arg0: i32) -> (i32, i32) {
    %c0_i32 = arith.constant 0 : i32
    %c0_i32_0 = arith.constant 0 : i32
    %c0_i32_1 = arith.constant 0 : i32
    return %c0_i32, %c0_i32_0 : i32, i32
  }
  func.func @transform_7(%arg0: i32) -> (i32, i32) {
    %c0_i32 = arith.constant 0 : i32
    %c0_i32_0 = arith.constant 0 : i32
    return %arg0, %c0_i32 : i32, i32
  }
}

</mosaic_0001>

<bundles_post_ra>
// kernel: tpu_custom_call.1
= control target key start
LH: loop header
LB: loop body
LE: loop exit
PB: predicated region body
PF: predicated region fallthrough
CT: control target
= control target key end

     0   :  { %12 = vsyncpa [#allocation3], 0  ;;  %s647_s0 = inlined_call_operand.vmem [shape: f32[16,2], index: 0, kind: input, shape index: {}]   ;;  %s648_s1 = inlined_call_operand.vmem [shape: f32[2,128], index: 1, kind: input, shape index: {}]   ;;  %s649_s2 = inlined_call_operand.vmem [shape: f32[1,128], index: 2, kind: input, shape index: {}]   ;;  %s650_s3 = inlined_call_operand.hbm [shape: bf16[128,128], index: 3, kind: input, shape index: {}]   ;;  %s651_s4 = inlined_call_operand.vmem [shape: f32[1,128], index: 4, kind: input, shape index: {}]   ;;  %s652_s5 = inlined_call_operand.hbm [shape: bf16[128,128], index: 5, kind: input, shape index: {}]   ;;  %s653_s6 = inlined_call_operand.vmem [shape: f32[1,128], index: 6, kind: input, shape index: {}]   ;;  %s654_s7 = inlined_call_operand.hbm [shape: bf16[16,128], index: 7, kind: output, shape index: {}]  }
   0x1   :  { %13 = vsyncpa [#allocation6], 0 }
   0x2   :  { %14 = vsyncpa [#allocation4], 0  ;;  %s541_s24 = smov [#allocation2]  }
   0x3   :  { %s26_s25 = sshll.u32 %s541_s24, 4  ;;  %s27_s25 = int_to_ptr.vmem [resolvable:$true] %s26_s25 }
   0x4   :  { %s483_s26 = scalar_lea.vmem %s27_s25, 1024  ;;  %p488_p1 = scmp.lt.s32.totalorder %s27_s25, %s27_s25 }
   0x5   :  { %p484_p0 = scmp.ne.s32.totalorder %s27_s25, %s483_s26  ;;  %p489_p2 = scmp.lt.s32.totalorder %s483_s26, %s483_s26 }
   0x7   :  { %p490_p3 = por %p489_p2, %p488_p1 }
   0x9   :  { %p491_p4 = pnand %p490_p3, %p484_p0 }
   0xb   :  { %494 = shalt.err (!%p491_p4)
}
   0xc   :  { %s542_s27 = smov 64   ;;  %s543_s28 = smov 4  }
   0xd   :  { %32 = dma.hbm_to_vmem [thread:$0]  %s650_s3, 1024, %s27_s25, [#allocation3], %s542_s27, %s542_s27, %s543_s28  }
   0xe   :  { %s544_s8 = smov [#allocation5]  }
   0xf   :  { %s40_s9 = sshll.u32 %s544_s8, 4  ;;  %s41_s9 = int_to_ptr.vmem [resolvable:$true] %s40_s9 }
  0x10   :  { %s503_s10 = scalar_lea.vmem %s41_s9, 1024  ;;  %p508_p6 = scmp.lt.s32.totalorder %s41_s9, %s41_s9 }
  0x11   :  { %p504_p5 = scmp.ne.s32.totalorder %s41_s9, %s503_s10  ;;  %p509_p7 = scmp.lt.s32.totalorder %s503_s10, %s503_s10 }
  0x13   :  { %p510_p8 = por %p509_p7, %p508_p6 }
  0x15   :  { %p511_p9 = pnand %p510_p8, %p504_p5 }
  0x17   :  { %514 = shalt.err (!%p511_p9)
}
  0x18   :  { %46 = dma.hbm_to_vmem [thread:$0]  %s652_s5, 1024, %s41_s9, [#allocation6], %s542_s27, %s542_s27, %s543_s28  }
  0x19   :  { %535 = dma.done.wait [#allocation3], 1024  }
  0x1a   :  { %536 = vsyncadd [#allocation3], 4294966272 }
  0x1b   :  { %537 = dma.done.wait [#allocation6], 1024  }
  0x1c   :  { %538 = vsyncadd [#allocation6], 4294966272  ;;  %v545_v0 = vmov 1   ;;  %v546_v1 = vmov 0   ;;  %v547_v2 = vmov 0.0   ;;  %v56_v3 = vld [vmem:[%s647_s0] sm:$0xff] }
  0x1d   :  { %457 = vset.pattern.permute.xlu1 %v545_v0  ;;  %456 = vset.pattern.permute.xlu0 %v546_v1  ;;  %v459_v4 = vld [vmem:[#allocation2 + $0x38] sm:$0xff]   ;;  %v57_v5 = vld [vmem:[%s647_s0 + $0x8] sm:$0xff]  ;;  %v460_v6 = vld [vmem:[#allocation2 + $0x30] sm:$0xff]   ;;  %vm548_vm0 = vmmov 0   ;;  %s549_s22 = smov [#allocation7]  }
  0x1e   :  { %407 = vmatprep.subr.bf16.mxu0 %v547_v2  ;;  %427 = vmatprep.subr.bf16.mxu1 %v547_v2  ;;  %v461_v7 = vld [vmem:[#allocation2 + $0x28] sm:$0xff]   ;;  %v462_v8 = vld [vmem:[#allocation2 + $0x20] sm:$0xff]   ;;  %v467_v9 = vld [vmem:[#allocation5 + $0x38] sm:$0xff]   ;;  %s346_s23 = sshll.u32 %s549_s22, 4  ;;  %s347_s23 = int_to_ptr.vmem [resolvable:$true] %s346_s23 }
  0x1f   :  { %77 = vperm.xlu1 %457, %v56_v3   ;;  %61 = vperm.xlu0 %456, %v56_v3   ;;  %v468_v10 = vld [vmem:[#allocation5 + $0x30] sm:$0xff]   ;;  %v463_v11 = vld [vmem:[#allocation2 + $0x18] sm:$0xff]   ;;  %v469_v12 = vld [vmem:[#allocation5 + $0x28] sm:$0xff]   ;;  %p520_p11 = scmp.lt.s32.totalorder %s347_s23, %s347_s23 }
  0x20   :  { %408 = vmatpush3.bf16.msra.mxu0 %v459_v4  ;;  %423 = vmatprep.mubr.msk.bf16.mxu0 %vm548_vm0, %v547_v2  ;;  %v464_v13 = vld [vmem:[#allocation2 + $0x10] sm:$0xff]   ;;  %v470_v14 = vld [vmem:[#allocation5 + $0x20] sm:$0xff]   ;;  %v465_v15 = vld [vmem:[#allocation2 + $0x8] sm:$0xff]  }
  0x21   :  { %409 = vmatprep.subr.bf16.mxu0 %v547_v2  ;;  %443 = vmatprep.mubr.msk.bf16.mxu1 %vm548_vm0, %v547_v2  ;;  %v471_v16 = vld [vmem:[#allocation5 + $0x18] sm:$0xff]   ;;  %v466_v17 = vld [vmem:[#allocation2] sm:$0xff]   ;;  %v472_v36 = vld [vmem:[#allocation5 + $0x10] sm:$0xff]  }
  0x22   :  { %428 = vmatpush3.bf16.msra.mxu1 %v467_v9  ;;  %v360_v18 = vld [vmem:[%s648_s1 + $0x1] ss:$0 sm:$0xff]  ;;  %v359_v19 = vld [vmem:[%s648_s1] ss:$0 sm:$0xff]  ;;  %v473_v37 = vld [vmem:[#allocation5 + $0x8] sm:$0xff]  }
  0x23   :  { %81 = vperm.xlu1 %457, %v57_v5   ;;  %66 = vperm.xlu0 %456, %v57_v5   ;;  %v361_v25 = vld [vmem:[%s649_s2] ss:$0 sm:$0xff] }
  0x24   :  { %410 = vmatpush3.bf16.msra.mxu0 %v460_v6  ;;  %429 = vmatprep.subr.bf16.mxu1 %v547_v2  ;;  %v474_v38 = vld [vmem:[#allocation5] sm:$0xff]  }
  0x25   :  { %411 = vmatprep.subr.bf16.mxu0 %v547_v2  ;;  %v362_v39 = vld [vmem:[%s651_s4] ss:$0 sm:$0xff]  ;;  %s515_s4 = scalar_lea.vmem %s347_s23, 128 }
  0x26   :  { %430 = vmatpush3.bf16.msra.mxu1 %v468_v10  ;;  %v371_v50 = vld [vmem:[%s653_s6] ss:$0 sm:$0xff]  ;;  %p516_p10 = scmp.ne.s32.totalorder %s347_s23, %s515_s4  ;;  %p521_p12 = scmp.lt.s32.totalorder %s515_s4, %s515_s4 }
  0x27   :  { %458 = vset.pattern.permute.xlu0 %v545_v0  ;;  %431 = vmatprep.subr.bf16.mxu1 %v547_v2 }
  0x28   :  { %412 = vmatpush3.bf16.msra.mxu0 %v461_v7  ;;  %p522_p13 = por %p521_p12, %p520_p11 }
  0x29   :  { %413 = vmatprep.subr.bf16.mxu0 %v547_v2 }
  0x2a   :  { %432 = vmatpush3.bf16.msra.mxu1 %v469_v12  ;;  %p523_p0 = pnand %p522_p13, %p516_p10 }
  0x2b   :  { %433 = vmatprep.subr.bf16.mxu1 %v547_v2 }
  0x2c   :  { %414 = vmatpush3.bf16.msra.mxu0 %v462_v8 }
  0x2d   :  { %415 = vmatprep.subr.bf16.mxu0 %v547_v2 }
  0x2e   :  { %434 = vmatpush3.bf16.msra.mxu1 %v470_v14 }
  0x2f   :  { %435 = vmatprep.subr.bf16.mxu1 %v547_v2 }
  0x30   :  { %416 = vmatpush3.bf16.msra.mxu0 %v463_v11 }
  0x31   :  { %417 = vmatprep.subr.bf16.mxu0 %v547_v2 }
  0x32   :  { %436 = vmatpush3.bf16.msra.mxu1 %v471_v16 }
  0x33   :  { %437 = vmatprep.subr.bf16.mxu1 %v547_v2 }
  0x34   :  { %418 = vmatpush3.bf16.msra.mxu0 %v464_v13 }
  0x35   :  { %419 = vmatprep.subr.bf16.mxu0 %v547_v2 }
  0x36   :  { %438 = vmatpush3.bf16.msra.mxu1 %v472_v36 }
  0x37   :  { %439 = vmatprep.subr.bf16.mxu1 %v547_v2 }
  0x38   :  { %420 = vmatpush3.bf16.msra.mxu0 %v465_v15 }
  0x39   :  { %421 = vmatprep.subr.bf16.mxu0 %v547_v2 }
  0x3a   :  { %440 = vmatpush3.bf16.msra.mxu1 %v473_v37 }
  0x3b   :  { %441 = vmatprep.subr.bf16.mxu1 %v547_v2 }
  0x3c   :  { %422 = vmatpush3.bf16.msra.mxu0 %v466_v17 }
  0x3e   :  { %442 = vmatpush3.bf16.msra.mxu1 %v474_v38 }
  0x9a   :  { %v78_v20 = vpop.permute.xlu1 %77  ;;  %v62_v21 = vpop.permute.xlu0 %61 }
  0x9b   :  { %v88_v22 = vmul.f32 %v360_v18, %v78_v20  ;;  %v73_v23 = vmul.f32 %v359_v19, %v62_v21 }
  0x9d   :  { %v90_v24 = vadd.f32 %v88_v22, %v73_v23 }
  0x9e   :  { %v82_v26 = vpop.permute.xlu1 %81  ;;  %v67_v27 = vpop.permute.xlu0 %66 }
  0x9f   :  { %v89_v28 = vmul.f32 %v360_v18, %v82_v26  ;;  %v74_v29 = vmul.f32 %v359_v19, %v67_v27  ;;  %v99_v30 = vadd.f32 %v361_v25, %v90_v24 }
  0xa1   :  { %v91_v31 = vadd.f32 %v89_v28, %v74_v29  ;;  %v101_v33 = vmax.f32 %v99_v30, 0.0 }
  0xa3   :  { %v100_v32 = vadd.f32 %v361_v25, %v91_v31 }
  0xa5   :  { %v102_v34 = vmax.f32 %v100_v32, 0.0 }
  0xa7   :  { %v103_v35 = vpack.c.bf16 %v102_v34, %v101_v33 }
  0xa9   :  { %424 = vmatmul.mubr.bf16.vlgmr.msra.gmra.mxu0 %v103_v35 }
 0x169   :  { %v209_v40 = vpop.f32.mrf.mxu0 }
 0x16a   :  { %v210_v42 = vadd.f32 %v362_v39, %v209_v40 }
 0x16b   :  { %v425_v41 = vpop.f32.mrf.mxu0 }
 0x16c   :  { %v216_v46 = vmax.f32 %v210_v42, 0.0 }
 0x16d   :  { %v212_v43 = vpop.f32.mrf.mxu0 }
 0x16e   :  { %v213_v44 = vadd.f32 %v362_v39, %v212_v43 }
 0x16f   :  { %v426_v45 = vpop.f32.mrf.mxu0 }
 0x170   :  { %v217_v47 = vmax.f32 %v213_v44, 0.0 }
 0x172   :  { %v218_v48 = vpack.c.bf16 %v217_v47, %v216_v46 }
 0x174   :  { %444 = vmatmul.mubr.bf16.vlgmr.msra.gmra.mxu1 %v218_v48 }
 0x234   :  { %v324_v49 = vpop.f32.mrf.mxu1 }
 0x235   :  { %v325_v53 = vadd.f32 %v371_v50, %v324_v49 }
 0x236   :  { %v445_v51 = vpop.f32.mrf.mxu1 }
 0x238   :  { %v327_v52 = vpop.f32.mrf.mxu1 }
 0x239   :  { %v328_v54 = vadd.f32 %v371_v50, %v327_v52 }
 0x23a   :  { %v446_v55 = vpop.f32.mrf.mxu1 }
 0x23b   :  { %v387_v56 = vpack.c.bf16 %v328_v54, %v325_v53 }
 0x23d   :  { %388 = vst [vmem:[#allocation7] sm:$0xff] %v387_v56  }
 0x23e   :  { %526 = shalt.err (!%p523_p0)
}
 0x23f   :  { %352 = dma.vmem_to_hbm [thread:$0]  %s347_s23, 128, %s654_s7, [#allocation4], %s542_s27, %s542_s27, %s543_s28  }
 0x240   :  { %539 = dma.done.wait [#allocation4], 128  }
 0x241   :  { %540 = vsyncadd [#allocation4], 4294967168 }
 0x242   :  { %356 = vsyncpa [#allocation3], 1 }
 0x243   :  { %357 = vsyncpa [#allocation6], 1 }
 0x244   :  { %358 = vsyncpa [#allocation4], 1 }

</bundles_post_ra>
